<compile_context>
chip_gen: v5e
topology: v5e:2x2
jax: 0.10.0
libtpu: 0.0.40
codegen_flags: <defaults>
</compile_context>

<pallas_src>
import jax
import jax.numpy as jnp
from jax.experimental import pallas as pl
from jax.experimental.pallas import tpu as pltpu

_SUBLANE = 8               # f32 sublane tile
_MAX_ROW_TILE = 2048       # rows per grid step at large N (per-row VMEM cost is tiny)
_MEGACORE_SPLIT_ROWS = 256 # single-tile batches >= 2x this are split so v7x's 2 TCs share work


def _round_up(v, m):
    return ((v + m - 1) // m) * m


def _choose_row_tile(n):
    if n > _MAX_ROW_TILE:
        return _MAX_ROW_TILE
    if n >= 2 * _MEGACORE_SPLIT_ROWS:
        # >= 2 grid steps so dimension_semantics=("parallel",) can use both v7x cores.
        return _round_up(pl.cdiv(n, 2), _SUBLANE)
    # Single grid step; block row-dim equals the full array dim, so any n is legal.
    return n


def m2_mlp_kernel(x_ref, w1_ref, b1_ref, w2_ref, b2_ref, o_ref):
    # x_ref: (TN, H)   w1_ref: (H, H)   b1_ref: (1, H)
    # w2_ref: (H, C)   b2_ref: (1, C)   o_ref: (TN, C)
    x = x_ref[...]
    w1 = w1_ref[...]
    w2 = w2_ref[...]
    b1 = b1_ref[...].astype(jnp.float32)
    b2 = b2_ref[...].astype(jnp.float32)

    # dropout(x) with training=False => identity
    # TODO(synk): training-mode dropout (stateful PRNG masks) not implemented; eval semantics only.

    # h = x + tanh(x) @ W1 + b1   (operands in input dtype, f32 accumulate on MXU)
    h = (x.astype(jnp.float32)
         + jnp.dot(jnp.tanh(x), w1, preferred_element_type=jnp.float32)
         + b1)

    # out = tanh(h) @ W2 + b2
    y = jnp.dot(jnp.tanh(h).astype(w2.dtype), w2,
                preferred_element_type=jnp.float32) + b2

    o_ref[...] = y.astype(o_ref.dtype)


def m2_mlp_forward(x, w1, b1, w2, b2):
    """Eval-mode M2_MLP: out = tanh(x + tanh(x) @ W1 + b1) @ W2 + b2."""
    N, H = x.shape
    C = w2.shape[1]
    itemsize = jnp.dtype(x.dtype).itemsize

    b1 = b1.reshape(1, H)
    b2 = b2.reshape(1, C)

    tile_n = _choose_row_tile(N)
    grid = (pl.cdiv(N, tile_n),)  # partial last block is clipped by Pallas on writeback

    # Resident-weight footprint (single VMEM copy, constant across the grid).
    weight_bytes = (w1.size + b1.size + w2.size + b2.size) * itemsize
    # TODO(synk): if H grows so large that W1 (H*H*4 B) cannot be VMEM-resident
    # (>~2.8k on v7x's 64 MiB), add a K-tiled "arbitrary" grid axis with an f32
    # accumulator instead of the resident-weight path.

    # Scoped-VMEM sizing: double-buffered x/out tiles + resident weights + headroom.
    pipeline_bytes = 2 * tile_n * (H + C) * itemsize
    vmem_needed = 2 * pipeline_bytes + weight_bytes + (1 << 20)
    compiler_kwargs = dict(dimension_semantics=("parallel",))
    if vmem_needed > (16 << 20):  # above the smallest (v5e) scoped default
        compiler_kwargs["vmem_limit_bytes"] = min(vmem_needed, 64 << 20)

    # Advisory cost estimate for XLA's scheduler around the custom call.
    flops = 2 * N * H * H + 2 * N * H * C
    transcendentals = 2 * N * H
    bytes_accessed = itemsize * (x.size + N * C) + weight_bytes

    return pl.pallas_call(
        m2_mlp_kernel,
        out_shape=jax.ShapeDtypeStruct((N, C), x.dtype),
        grid=grid,
        in_specs=[
            # Streamed activations (pipelined per row tile).
            pl.BlockSpec((tile_n, H), lambda i: (i, 0)),
            # Resident operands: full-array VMEM, single copy, no per-step DMA.
            pl.BlockSpec(memory_space=pltpu.MemorySpace.VMEM),   # W1 (H, H)
            pl.BlockSpec(memory_space=pltpu.MemorySpace.VMEM),   # b1 (1, H)
            pl.BlockSpec(memory_space=pltpu.MemorySpace.VMEM),   # W2 (H, C)
            pl.BlockSpec(memory_space=pltpu.MemorySpace.VMEM),   # b2 (1, C)
        ],
        out_specs=pl.BlockSpec((tile_n, C), lambda i: (i, 0)),
        compiler_params=pltpu.CompilerParams(**compiler_kwargs),
        cost_estimate=pl.CostEstimate(flops=flops,
                                      transcendentals=transcendentals,
                                      bytes_accessed=bytes_accessed),
    )(x, w1, b1, w2, b2)


def reference_forward(x, w1, b1, w2, b2):
    h = x + jnp.tanh(x) @ w1 + b1.reshape(1, -1)
    return jnp.tanh(h) @ w2 + b2.reshape(1, -1)


if __name__ == "__main__":
    # Small shapes implied by the module: opt['hidden_dim']=32, num_classes=8.
    N, HIDDEN, NUM_CLASSES = 16, 32, 8

    key = jax.random.PRNGKey(0)
    kx, k1, k2, k3, k4 = jax.random.split(key, 5)

    x = jax.random.normal(kx, (N, HIDDEN), dtype=jnp.float32)

    # Deterministic parameter init (uniform, roughly like torch Linear default).
    lim1 = 1.0 / (HIDDEN ** 0.5)
    w1 = jax.random.uniform(k1, (HIDDEN, HIDDEN), jnp.float32, -lim1, lim1)
    b1 = jax.random.uniform(k2, (HIDDEN,), jnp.float32, -lim1, lim1)
    w2 = jax.random.uniform(k3, (HIDDEN, NUM_CLASSES), jnp.float32, -lim1, lim1)
    b2 = jax.random.uniform(k4, (NUM_CLASSES,), jnp.float32, -lim1, lim1)

    out = m2_mlp_forward(x, w1, b1, w2, b2)
    out = jax.block_until_ready(out)

    ref = reference_forward(x, w1, b1, w2, b2)
    assert out.shape == (N, NUM_CLASSES)
    assert jnp.allclose(out, ref, atol=1e-5, rtol=1e-5), "mismatch vs reference"

    print("KERNEL_OK")
</pallas_src>

<mosaic_0001>
module attributes {stable_mosaic.version = 11 : i64} {
  func.func @m2_mlp_kernel(%arg0: i32, %arg1: memref<16x32xf32, #tpu.memory_space<vmem>>, %arg2: memref<32x32xf32, #tpu.memory_space<vmem>>, %arg3: memref<1x32xf32, #tpu.memory_space<vmem>>, %arg4: memref<32x8xf32, #tpu.memory_space<vmem>>, %arg5: memref<1x8xf32, #tpu.memory_space<vmem>>, %arg6: memref<16x8xf32, #tpu.memory_space<vmem>>) attributes {dimension_semantics = [#tpu.dimension_semantics<parallel>], iteration_bounds = array<i64: 1>, scalar_prefetch = 0 : i64, scratch_operands = 0 : i64, tpu.core_type = #tpu.core_type<tc>, window_params = [{transform_indices = @transform_0, window_bounds = array<i64: 16, 32>}, {pipeline_mode = #tpu.pipeline_mode<synchronous>, transform_indices = @transform_1, window_bounds = array<i64: 32, 32>}, {pipeline_mode = #tpu.pipeline_mode<synchronous>, transform_indices = @transform_2, window_bounds = array<i64: 1, 32>}, {pipeline_mode = #tpu.pipeline_mode<synchronous>, transform_indices = @transform_3, window_bounds = array<i64: 32, 8>}, {pipeline_mode = #tpu.pipeline_mode<synchronous>, transform_indices = @transform_4, window_bounds = array<i64: 1, 8>}, {transform_indices = @transform_5, window_bounds = array<i64: 16, 8>}]} {
    %c0 = arith.constant 0 : index
    %c0_0 = arith.constant 0 : index
    %0 = vector.load %arg1[%c0, %c0_0] : memref<16x32xf32, #tpu.memory_space<vmem>>, vector<16x32xf32>
    %c0_1 = arith.constant 0 : index
    %c0_2 = arith.constant 0 : index
    %1 = vector.load %arg2[%c0_1, %c0_2] : memref<32x32xf32, #tpu.memory_space<vmem>>, vector<32x32xf32>
    %c0_3 = arith.constant 0 : index
    %c0_4 = arith.constant 0 : index
    %2 = vector.load %arg4[%c0_3, %c0_4] : memref<32x8xf32, #tpu.memory_space<vmem>>, vector<32x8xf32>
    %c0_5 = arith.constant 0 : index
    %c0_6 = arith.constant 0 : index
    %3 = vector.load %arg3[%c0_5, %c0_6] : memref<1x32xf32, #tpu.memory_space<vmem>>, vector<1x32xf32>
    %c0_7 = arith.constant 0 : index
    %c0_8 = arith.constant 0 : index
    %4 = vector.load %arg5[%c0_7, %c0_8] : memref<1x8xf32, #tpu.memory_space<vmem>>, vector<1x8xf32>
    %5 = math.tanh %0 : vector<16x32xf32>
    %cst = arith.constant dense<0.000000e+00> : vector<16x32xf32>
    %6 = tpu.matmul %5, %1, %cst {dimension_numbers = #tpu.dot_dimension_numbers<[1], [0], [0], [1], [0, 0, 1, 1], [], []>} : vector<16x32xf32>, vector<32x32xf32>, vector<16x32xf32> -> vector<16x32xf32>
    %7 = arith.addf %0, %6 : vector<16x32xf32>
    %8 = vector.broadcast %3 : vector<1x32xf32> to vector<16x32xf32>
    %9 = arith.addf %7, %8 : vector<16x32xf32>
    %10 = math.tanh %9 : vector<16x32xf32>
    %cst_9 = arith.constant dense<0.000000e+00> : vector<16x8xf32>
    %11 = tpu.matmul %10, %2, %cst_9 {dimension_numbers = #tpu.dot_dimension_numbers<[1], [0], [0], [1], [0, 0, 1, 1], [], []>} : vector<16x32xf32>, vector<32x8xf32>, vector<16x8xf32> -> vector<16x8xf32>
    %12 = vector.broadcast %4 : vector<1x8xf32> to vector<16x8xf32>
    %13 = arith.addf %11, %12 : vector<16x8xf32>
    %c0_10 = arith.constant 0 : index
    %c0_11 = arith.constant 0 : index
    %14 = vector.load %arg6[%c0_10, %c0_11] : memref<16x8xf32, #tpu.memory_space<vmem>>, vector<16x8xf32>
    tpu.vector_store %arg6[%c0_10, %c0_11], %13 {strides = array<i32>} : memref<16x8xf32, #tpu.memory_space<vmem>>, vector<16x8xf32>,
    return
  }
  func.func @transform_0(%arg0: i32) -> (i32, i32) {
    %c0_i32 = arith.constant 0 : i32
    %c0_i32_0 = arith.constant 0 : i32
    return %arg0, %c0_i32 : i32, i32
  }
  func.func @transform_1(%arg0: i32) -> (i32, i32) {
    %c0_i32 = arith.constant 0 : i32
    %c0_i32_0 = arith.constant 0 : i32
    %c0_i32_1 = arith.constant 0 : i32
    return %c0_i32, %c0_i32_0 : i32, i32
  }
  func.func @transform_2(%arg0: i32) -> (i32, i32) {
    %c0_i32 = arith.constant 0 : i32
    %c0_i32_0 = arith.constant 0 : i32
    %c0_i32_1 = arith.constant 0 : i32
    return %c0_i32, %c0_i32_0 : i32, i32
  }
  func.func @transform_3(%arg0: i32) -> (i32, i32) {
    %c0_i32 = arith.constant 0 : i32
    %c0_i32_0 = arith.constant 0 : i32
    %c0_i32_1 = arith.constant 0 : i32
    return %c0_i32, %c0_i32_0 : i32, i32
  }
  func.func @transform_4(%arg0: i32) -> (i32, i32) {
    %c0_i32 = arith.constant 0 : i32
    %c0_i32_0 = arith.constant 0 : i32
    %c0_i32_1 = arith.constant 0 : i32
    return %c0_i32, %c0_i32_0 : i32, i32
  }
  func.func @transform_5(%arg0: i32) -> (i32, i32) {
    %c0_i32 = arith.constant 0 : i32
    %c0_i32_0 = arith.constant 0 : i32
    return %arg0, %c0_i32 : i32, i32
  }
}

</mosaic_0001>

<bundles_post_ra>
// kernel: tpu_custom_call.1
= control target key start
LH: loop header
LB: loop body
LE: loop exit
PB: predicated region body
PF: predicated region fallthrough
CT: control target
= control target key end

     0   :  { %10 = vsyncpa [#allocation3], 0  ;;  %s180_s21 = smov [#allocation2]   ;;  %s181_s23 = smov 128   ;;  %s256_s0 = inlined_call_operand.hbm [shape: f32[16,32], index: 0, kind: input, shape index: {}]   ;;  %s257_s1 = inlined_call_operand.vmem [shape: f32[32,32], index: 1, kind: input, shape index: {}]   ;;  %s258_s2 = inlined_call_operand.vmem [shape: f32[1,32], index: 2, kind: input, shape index: {}]   ;;  %s259_s3 = inlined_call_operand.vmem [shape: f32[32,8], index: 3, kind: input, shape index: {}]   ;;  %s260_s4 = inlined_call_operand.vmem [shape: f32[1,8], index: 4, kind: input, shape index: {}]   ;;  %s261_s5 = inlined_call_operand.vmem [shape: f32[16,8], index: 5, kind: output, shape index: {}]  }
   0x1   :  { %s15_s20 = sshll.u32 %s256_s0, 4  ;;  %s17_s22 = sshll.u32 %s180_s21, 4  ;;  %s16_s20 = int_to_ptr.hbm [resolvable:$true] %s15_s20  ;;  %s18_s22 = int_to_ptr.vmem [resolvable:$true] %s17_s22 }
   0x2   :  { %s182_s24 = smov 8  }
   0x3   :  { %23 = dma.hbm_to_vmem [thread:$0]  %s16_s20, 256, %s18_s22, [#allocation3], %s181_s23, %s181_s23, %s182_s24  }
   0x4   :  { %178 = dma.done.wait [#allocation3], 256  }
   0x5   :  { %179 = vsyncadd [#allocation3], 4294967040  ;;  %v41_v0 = vld [vmem:[%s257_s1 + $0x18] sm:$0xff]  ;;  %v40_v1 = vld [vmem:[%s257_s1 + $0x10] sm:$0xff]  ;;  %vm50_vm0 = vcmask 261120   ;;  %vm121_vm1 = vcmask 64512  }
   0x6   :  { %133 = vmatpush.msra.mxu2 %v41_v0  ;;  %v37_v2 = vld [vmem:[#allocation2 + $0x8] sm:$0xff]  ;;  %69 = vmatpush.msra.mxu0 %v41_v0  ;;  %v36_v3 = vld [vmem:[#allocation2] sm:$0xff]  ;;  %v45_v8 = vld [vmem:[%s259_s3 + $0x18] sm:$0xff] }
   0x7   :  { %v39_v4 = vld [vmem:[%s257_s1 + $0x8] sm:$0xff]  ;;  %146 = vtanh.f32 %v37_v2  ;;  %v38_v5 = vld [vmem:[%s257_s1] sm:$0xff]  ;;  %137 = vmatpush.msra.mxu3 %v45_v8  ;;  %v44_v9 = vld [vmem:[%s259_s3 + $0x10] sm:$0xff]  ;;  %110 = vmatpush.msra.mxu1 %v45_v8 }
   0x8   :  { %134 = vmatpush.msra.mxu2 %v40_v1  ;;  %70 = vmatpush.msra.mxu0 %v40_v1  ;;  %148 = vtanh.f32 %v36_v3  ;;  %v43_v10 = vld [vmem:[%s259_s3 + $0x8] sm:$0xff]  ;;  %v42_v11 = vld [vmem:[%s259_s3] sm:$0xff] }
   0x9   :  { %138 = vmatpush.msra.mxu3 %v44_v9  ;;  %111 = vmatpush.msra.mxu1 %v44_v9  ;;  %v144_v13 = vld [vmem:[%s258_s2] ss:$0 sm:$0xff] }
   0xa   :  { %135 = vmatpush.msra.mxu2 %v39_v4  ;;  %71 = vmatpush.msra.mxu0 %v39_v4  ;;  %v145_v21 = vld [vmem:[%s260_s4] ss:$0 sm:$0xff] }
   0xb   :  { %139 = vmatpush.msra.mxu3 %v43_v10  ;;  %112 = vmatpush.msra.mxu1 %v43_v10 }
   0xc   :  { %136 = vmatpush.msra.mxu2 %v38_v5  ;;  %72 = vmatpush.msra.mxu0 %v38_v5 }
   0xd   :  { %v147_v6 = vpop.eup %146  ;;  %140 = vmatpush.msra.mxu3 %v42_v11  ;;  %113 = vmatpush.msra.mxu1 %v42_v11 }
   0xe   :  { %v149_v7 = vpop.eup %148  ;;  %130 = vmatmul.msk.f32.vlgmr.msra.gmra.mxu2 %vm50_vm0, %v147_v6 }
   0xf   :  { %129 = vmatmul.msk.f32.vlgmr.msra.gmra.mxu0 %vm50_vm0, %v149_v7 }
  0x8c   :  { %v74_v12 = vpop.f32.mrf.mxu0 }
  0x8d   :  { %v80_v14 = vadd.f32 %v74_v12, %v36_v3 }
  0x8f   :  { %v85_v15 = vadd.f32 %v144_v13, %v80_v14 }
  0x91   :  { %v77_v16 = vpop.f32.mrf.mxu2  ;;  %150 = vtanh.f32 %v85_v15 }
  0x92   :  { %v81_v17 = vadd.f32 %v77_v16, %v37_v2 }
  0x94   :  { %v86_v18 = vadd.f32 %v144_v13, %v81_v17 }
  0x96   :  { %152 = vtanh.f32 %v86_v18 }
  0x97   :  { %v151_v19 = vpop.eup %150 }
  0x98   :  { %131 = vmatmul.msk.f32.vlgmr.msra.gmra.mxu1 %vm50_vm0, %v151_v19 }
  0x9c   :  { %v153_v20 = vpop.eup %152 }
  0x9d   :  { %132 = vmatmul.msk.f32.vlgmr.msra.gmra.mxu3 %vm50_vm0, %v153_v20 }
 0x115   :  { %v115_v22 = vpop.f32.mrf.mxu1 }
 0x116   :  { %v116_v23 = vadd.f32 %v145_v21, %v115_v22 }
 0x118   :  { %122 = vst.msk [vmem:[%s261_s5] sm:$0xff] %vm121_vm1, %v116_v23 }
 0x120   :  { %v118_v24 = vpop.f32.mrf.mxu3 }
 0x121   :  { %v119_v25 = vadd.f32 %v145_v21, %v118_v24 }
 0x123   :  { %123 = vst.msk [vmem:[%s261_s5 + $0x8] sm:$0xff] %vm121_vm1, %v119_v25 }
 0x124   :  { %128 = vsyncpa [#allocation3], 1 }

</bundles_post_ra>
